<compile_context>
chip_gen: v5e
topology: v5e:2x2
jax: 0.10.0
libtpu: 0.0.40
codegen_flags: <defaults>
</compile_context>

<pallas_src>
from functools import partial
import random

import jax
import jax.numpy as jnp
from jax.experimental import pallas as pl
from jax.experimental.pallas import tpu as pltpu


_LANE = 512            # lane width: multiple of 128 -> lane-dense, unmasked stores
_MAX_BLOCK_ROWS = 512  # (512, 512) f32 block = 1 MiB; double-buffered x/noise/out ~ 6 MiB VMEM


def _add_noise_kernel(x_ref, n_ref, o_ref, *, mean, std):
    """Elementwise fused add: o = x + n * std + mean (computed in f32)."""
    x = x_ref[...].astype(jnp.float32)
    n = n_ref[...].astype(jnp.float32)
    o_ref[...] = (x + n * std + mean).astype(o_ref.dtype)


def add_gaussian_noise(x, *, key, apply_noise, mean=0.0, std=1.0):
    """x: any-shape float array. `apply_noise` must be a concrete Python bool
    (host-level Bernoulli gate, exactly like the PyTorch module)."""
    if not apply_noise:
        # Host gating: skip the pallas_call entirely -> no HBM traffic, no launch.
        return x

    orig_shape = x.shape
    orig_dtype = x.dtype

    # Flatten and pad to a lane-dense (rows, _LANE) slab.
    flat = x.reshape(-1)
    total = flat.shape[0]
    rows = -(-total // _LANE)                     # ceil div
    if rows > _MAX_BLOCK_ROWS:
        block_rows = _MAX_BLOCK_ROWS              # multiple of 8
        rows = -(-rows // block_rows) * block_rows
    else:
        block_rows = rows                         # full-extent block (legal for any size)
    padded = rows * _LANE
    if padded != total:
        flat = jnp.pad(flat, (0, padded - total))
    x2d = flat.reshape(rows, _LANE)

    # Host/JAX-generated N(0,1) noise (mirrors torch.randn on the host).
    noise2d = jax.random.normal(key, (rows, _LANE), dtype=jnp.float32)

    grid = (rows // block_rows,)
    kernel = partial(_add_noise_kernel, mean=float(mean), std=float(std))

    out2d = pl.pallas_call(
        kernel,
        out_shape=jax.ShapeDtypeStruct((rows, _LANE), orig_dtype),
        grid_spec=pl.GridSpec(
            grid=grid,
            in_specs=[
                pl.BlockSpec((block_rows, _LANE), lambda i: (i, 0)),
                pl.BlockSpec((block_rows, _LANE), lambda i: (i, 0)),
            ],
            out_specs=pl.BlockSpec((block_rows, _LANE), lambda i: (i, 0)),
        ),
        compiler_params=pltpu.CompilerParams(
            dimension_semantics=("parallel",),   # v7x: shard row tiles across both TCs
        ),
    )(x2d, noise2d)

    return out2d.reshape(-1)[:total].reshape(orig_shape)


if __name__ == "__main__":
    # Module hyper-parameters (same defaults as the PyTorch __init__).
    MEAN, STD, P = 0.0, 1.0, 0.5

    key = jax.random.PRNGKey(0)
    kx, knoise = jax.random.split(key)
    x = jax.random.normal(kx, (2, 4, 16, 16), dtype=jnp.float32)

    # Host-level Bernoulli gate (mirrors `random.random() < self.p`), made
    # deterministic for this synthetic script.
    random.seed(0)
    apply_noise = random.random() < P
    out = add_gaussian_noise(x, key=knoise, apply_noise=apply_noise, mean=MEAN, std=STD)
    out = jax.block_until_ready(out)
    assert out.shape == x.shape and out.dtype == x.dtype

    # Explicitly exercise both branches for sanity checks.
    out_noisy = jax.block_until_ready(
        add_gaussian_noise(x, key=knoise, apply_noise=True, mean=MEAN, std=STD))
    out_id = jax.block_until_ready(
        add_gaussian_noise(x, key=knoise, apply_noise=False, mean=MEAN, std=STD))

    assert out_noisy.shape == x.shape and out_noisy.dtype == x.dtype
    assert not bool(jnp.allclose(out_noisy, x)), "noise branch must change x"
    assert bool(jnp.allclose(out_id, x)), "identity branch must return x unchanged"

    # Recovered noise should look like N(mean, std).
    diff = out_noisy - x
    assert abs(float(jnp.mean(diff)) - MEAN) < 0.2, "noise mean off"
    assert abs(float(jnp.std(diff)) - STD) < 0.2, "noise std off"

    print("KERNEL_OK")
</pallas_src>

<mosaic_0001>
module attributes {stable_mosaic.version = 11 : i64} {
  func.func @_add_noise_kernel(%arg0: i32, %arg1: memref<4x512xf32, #tpu.memory_space<vmem>>, %arg2: memref<4x512xf32, #tpu.memory_space<vmem>>, %arg3: memref<4x512xf32, #tpu.memory_space<vmem>>) attributes {dimension_semantics = [#tpu.dimension_semantics<parallel>], iteration_bounds = array<i64: 1>, scalar_prefetch = 0 : i64, scratch_operands = 0 : i64, tpu.core_type = #tpu.core_type<tc>, window_params = [{transform_indices = @transform_0, window_bounds = array<i64: 4, 512>}, {transform_indices = @transform_1, window_bounds = array<i64: 4, 512>}, {transform_indices = @transform_2, window_bounds = array<i64: 4, 512>}]} {
    %c0 = arith.constant 0 : index
    %c0_0 = arith.constant 0 : index
    %0 = vector.load %arg1[%c0, %c0_0] : memref<4x512xf32, #tpu.memory_space<vmem>>, vector<4x512xf32>
    %c0_1 = arith.constant 0 : index
    %c0_2 = arith.constant 0 : index
    %1 = vector.load %arg2[%c0_1, %c0_2] : memref<4x512xf32, #tpu.memory_space<vmem>>, vector<4x512xf32>
    %cst = arith.constant 1.000000e+00 : f32
    %2 = vector.broadcast %cst : f32 to vector<4x512xf32>
    %3 = arith.mulf %1, %2 : vector<4x512xf32>
    %4 = arith.addf %0, %3 : vector<4x512xf32>
    %cst_3 = arith.constant 0.000000e+00 : f32
    %5 = vector.broadcast %cst_3 : f32 to vector<4x512xf32>
    %6 = arith.addf %4, %5 : vector<4x512xf32>
    %c0_4 = arith.constant 0 : index
    %c0_5 = arith.constant 0 : index
    %7 = vector.load %arg3[%c0_4, %c0_5] : memref<4x512xf32, #tpu.memory_space<vmem>>, vector<4x512xf32>
    tpu.vector_store %arg3[%c0_4, %c0_5], %6 {strides = array<i32>} : memref<4x512xf32, #tpu.memory_space<vmem>>, vector<4x512xf32>,
    return
  }
  func.func @transform_0(%arg0: i32) -> (i32, i32) {
    %c0_i32 = arith.constant 0 : i32
    %c0_i32_0 = arith.constant 0 : i32
    return %arg0, %c0_i32 : i32, i32
  }
  func.func @transform_1(%arg0: i32) -> (i32, i32) {
    %c0_i32 = arith.constant 0 : i32
    %c0_i32_0 = arith.constant 0 : i32
    return %arg0, %c0_i32 : i32, i32
  }
  func.func @transform_2(%arg0: i32) -> (i32, i32) {
    %c0_i32 = arith.constant 0 : i32
    %c0_i32_0 = arith.constant 0 : i32
    return %arg0, %c0_i32 : i32, i32
  }
}

</mosaic_0001>

<bundles_post_ra>
// kernel: tpu_custom_call.1
= control target key start
LH: loop header
LB: loop body
LE: loop exit
PB: predicated region body
PF: predicated region fallthrough
CT: control target
= control target key end

     0   :  { %7 = vsyncpa [#allocation3], 0  ;;  %s176_s0 = inlined_call_operand.hbm [shape: f32[4,512], index: 0, kind: input, shape index: {}]   ;;  %s177_s1 = inlined_call_operand.hbm [shape: f32[4,512], index: 1, kind: input, shape index: {}]   ;;  %s178_s2 = inlined_call_operand.hbm [shape: f32[4,512], index: 2, kind: output, shape index: {}]  }
   0x1   :  { %8 = vsyncpa [#allocation6], 0 }
   0x2   :  { %9 = vsyncpa [#allocation4], 0  ;;  %s15_s11 = sshll.u32 %s176_s0, 4  ;;  %s149_s12 = smov [#allocation2]   ;;  %s16_s11 = int_to_ptr.hbm [resolvable:$true] %s15_s11 }
   0x3   :  { %s17_s13 = sshll.u32 %s149_s12, 4  ;;  %s26_s16 = sshll.u32 %s177_s1, 4  ;;  %s18_s13 = int_to_ptr.vmem [resolvable:$true] %s17_s13  ;;  %s27_s16 = int_to_ptr.hbm [resolvable:$true] %s26_s16 }
   0x4   :  { %20 = dma.hbm_to_vmem [thread:$0]  %s16_s11, 256, %s18_s13, [#allocation3]  }
   0x5   :  { %s150_s17 = smov [#allocation5]  }
   0x6   :  { %s28_s18 = sshll.u32 %s150_s17, 4  ;;  %s29_s18 = int_to_ptr.vmem [resolvable:$true] %s28_s18 }
   0x7   :  { %31 = dma.hbm_to_vmem [thread:$0]  %s27_s16, 256, %s29_s18, [#allocation6]  }
   0x8   :  { %143 = dma.done.wait [#allocation3], 256  }
   0x9   :  { %144 = vsyncadd [#allocation3], 4294967040 }
   0xa   :  { %145 = dma.done.wait [#allocation6], 256  }
   0xb   :  { %146 = vsyncadd [#allocation6], 4294967040  ;;  %s151_s19 = smov [#allocation7]   ;;  %s57_s22 = sshll.u32 %s178_s2, 4  ;;  %v40_v0 = vld [vmem:[#allocation2] sm:$0xff]  ;;  %v42_v1 = vld [vmem:[#allocation5] sm:$0xff]  ;;  %s58_s22 = int_to_ptr.hbm [resolvable:$true] %s57_s22 }
   0xc   :  { %s55_s0 = sshll.u32 %s151_s19, 4  ;;  %v41_v2 = vld [vmem:[#allocation2 + $0x8] sm:$0xff]  ;;  %v44_v3 = vadd.f32 %v42_v1, %v40_v0  ;;  %v43_v4 = vld [vmem:[#allocation5 + $0x8] sm:$0xff]  ;;  %s56_s0 = int_to_ptr.vmem [resolvable:$true] %s55_s0 }
   0xd   :  { %v45_v5 = vadd.f32 %v43_v4, %v41_v2 }
   0xe   :  { %48 = vst [vmem:[#allocation7] sm:$0xff] %v44_v3 }
   0xf   :  { %49 = vst [vmem:[#allocation7 + $0x8] sm:$0xff] %v45_v5 }
  0x10   :  { %60 = dma.vmem_to_hbm [thread:$0]  %s56_s0, 256, %s58_s22, [#allocation4]  }
  0x11   :  { %147 = dma.done.wait [#allocation4], 256  }
  0x12   :  { %148 = vsyncadd [#allocation4], 4294967040 }
  0x13   :  { %65 = vsyncpa [#allocation3], 1 }
  0x14   :  { %66 = vsyncpa [#allocation6], 1 }
  0x15   :  { %67 = vsyncpa [#allocation4], 1 }

</bundles_post_ra>
